<compile_context>
chip_gen: v7x
topology: tpu7x:2x2x1
jax: 0.10.0
libtpu: 0.0.40
codegen_flags: <defaults>
</compile_context>

<pallas_src>
import functools
import math

import jax
import jax.numpy as jnp
from jax import lax
from jax.experimental import pallas as pl
from jax.experimental.pallas import tpu as pltpu

_SQRT2 = math.sqrt(2.0)


def _round_up(x, m):
    return (x + m - 1) // m * m


# ---------------------------------------------------------------------------
# Kernel 1: transform = dense(H,H) -> exact gelu -> LayerNorm(eps=1e-12)
# Inputs x / w1 are bf16 (MXU), all epilogue math in f32, output stored bf16.
# ---------------------------------------------------------------------------
def _transform_kernel(x_ref, w1_ref, b1_ref, gamma_ref, beta_ref, t_ref):
    h = jnp.dot(x_ref[...], w1_ref[...], preferred_element_type=jnp.float32)
    h = h + b1_ref[...]                                     # (tm, H) f32
    # exact (erf-form) gelu, matching BERT's gelu
    h = 0.5 * h * (1.0 + lax.erf(h / _SQRT2))
    # LayerNorm over hidden axis, biased variance, eps = 1e-12, f32 math
    mean = jnp.mean(h, axis=-1, keepdims=True)
    var = jnp.mean(jnp.square(h - mean), axis=-1, keepdims=True)
    hn = (h - mean) * lax.rsqrt(var + 1e-12)
    t_ref[...] = (hn * gamma_ref[...] + beta_ref[...]).astype(t_ref.dtype)


# ---------------------------------------------------------------------------
# Kernel 2: decoder GEMM  (tm,H)bf16 @ (H,tn)bf16 -> f32, + bias, f32 output.
# K (=H) is untiled; both grid axes are independent -> fully parallel.
# ---------------------------------------------------------------------------
def _decoder_kernel(t_ref, wd_ref, bd_ref, out_ref):
    acc = jnp.dot(t_ref[...], wd_ref[...], preferred_element_type=jnp.float32)
    out_ref[...] = (acc + bd_ref[...]).astype(out_ref.dtype)


def prepare_params(params, *, compute_dtype=jnp.bfloat16):
    """Pre-transpose / pre-cast weights once (at load time, not per forward)."""
    return {
        "w1_t": params["dense_w"].T.astype(compute_dtype),        # (H, H)
        "b1": params["dense_b"][None, :].astype(jnp.float32),      # (1, H)
        "gamma": params["ln_gamma"][None, :].astype(jnp.float32),  # (1, H)
        "beta": params["ln_beta"][None, :].astype(jnp.float32),    # (1, H)
        "wd_t": params["decoder_w"].T.astype(compute_dtype),       # (H, V)
        "bd": params["decoder_b"][None, :].astype(jnp.float32),    # (1, V)
    }


@functools.partial(jax.jit, static_argnames=("tm", "tn"))
def decoder_prediction_head(hidden_states, prepared, *, tm=256, tn=1024):
    """hidden_states: (B, S, H) float32.  Returns (B, S, V) float32."""
    B, S, H = hidden_states.shape
    V = prepared["wd_t"].shape[1]
    M = B * S
    compute_dtype = prepared["wd_t"].dtype

    # Adapt tiles to small shapes; pad rows / vocab up to tile multiples.
    tm = min(tm, _round_up(M, 16))
    tn = min(tn, _round_up(V, 128))
    Mp = _round_up(M, tm)
    Vp = _round_up(V, tn)

    x2d = hidden_states.reshape(M, H).astype(compute_dtype)
    if Mp != M:
        x2d = jnp.pad(x2d, ((0, Mp - M), (0, 0)))
    wd_t = prepared["wd_t"]
    bd = prepared["bd"]
    if Vp != V:
        wd_t = jnp.pad(wd_t, ((0, 0), (0, Vp - V)))
        bd = jnp.pad(bd, ((0, 0), (0, Vp - V)))

    # ---- pass 1: dense + gelu + LayerNorm, bf16 activations out -----------
    t_act = pl.pallas_call(
        _transform_kernel,
        out_shape=jax.ShapeDtypeStruct((Mp, H), compute_dtype),
        grid_spec=pltpu.PrefetchScalarGridSpec(
            num_scalar_prefetch=0,
            grid=(Mp // tm,),
            in_specs=[
                pl.BlockSpec((tm, H), lambda i: (i, 0)),   # x rows (bf16)
                pl.BlockSpec((H, H), lambda i: (0, 0)),    # dense W^T (bf16)
                pl.BlockSpec((1, H), lambda i: (0, 0)),    # dense b (f32)
                pl.BlockSpec((1, H), lambda i: (0, 0)),    # LN gamma (f32)
                pl.BlockSpec((1, H), lambda i: (0, 0)),    # LN beta (f32)
            ],
            out_specs=pl.BlockSpec((tm, H), lambda i: (i, 0)),
        ),
        compiler_params=pltpu.CompilerParams(
            dimension_semantics=("parallel",)),
    )(x2d, prepared["w1_t"], prepared["b1"], prepared["gamma"], prepared["beta"])

    # ---- pass 2: big decoder GEMM with large, lane-dense tiles -------------
    out = pl.pallas_call(
        _decoder_kernel,
        out_shape=jax.ShapeDtypeStruct((Mp, Vp), jnp.float32),
        grid_spec=pltpu.PrefetchScalarGridSpec(
            num_scalar_prefetch=0,
            grid=(Mp // tm, Vp // tn),
            in_specs=[
                pl.BlockSpec((tm, H), lambda i, j: (i, 0)),   # activations (bf16)
                pl.BlockSpec((H, tn), lambda i, j: (0, j)),   # decoder W^T tile (bf16)
                pl.BlockSpec((1, tn), lambda i, j: (0, j)),   # decoder bias tile (f32)
            ],
            out_specs=pl.BlockSpec((tm, tn), lambda i, j: (i, j)),
        ),
        compiler_params=pltpu.CompilerParams(
            dimension_semantics=("parallel", "parallel")),
    )(t_act, wd_t, bd)

    return out[:M, :V].reshape(B, S, V)


# ---------------------------------------------------------------------------
# Pure-JAX reference (f32) and parameter construction.
# ---------------------------------------------------------------------------
def _reference(hidden_states, params):
    h = hidden_states @ params["dense_w"].T + params["dense_b"]
    h = 0.5 * h * (1.0 + lax.erf(h / _SQRT2))
    mean = jnp.mean(h, axis=-1, keepdims=True)
    var = jnp.mean(jnp.square(h - mean), axis=-1, keepdims=True)
    h = (h - mean) / jnp.sqrt(var + 1e-12)
    h = h * params["ln_gamma"] + params["ln_beta"]
    return h @ params["decoder_w"].T + params["decoder_b"]


def make_params(key, hidden_size, vocab_size):
    k1, k2, k3, k4, k5 = jax.random.split(key, 5)
    return {
        "dense_w": 0.05 * jax.random.normal(k1, (hidden_size, hidden_size), jnp.float32),
        "dense_b": 0.05 * jax.random.normal(k2, (hidden_size,), jnp.float32),
        "ln_gamma": 1.0 + 0.05 * jax.random.normal(k3, (hidden_size,), jnp.float32),
        "ln_beta": 0.05 * jax.random.normal(k4, (hidden_size,), jnp.float32),
        "decoder_w": 0.05 * jax.random.normal(k5, (vocab_size, hidden_size), jnp.float32),
        # module inits the decoder bias to zeros
        "decoder_b": jnp.zeros((vocab_size,), jnp.float32),
    }


if __name__ == "__main__":
    B, S, H, V = 2, 8, 32, 256
    key = jax.random.PRNGKey(0)
    kx, kp = jax.random.split(key)
    x = jax.random.normal(kx, (B, S, H), jnp.float32)
    params = make_params(kp, H, V)
    prepared = prepare_params(params)          # one-time weight transpose/cast

    out = decoder_prediction_head(x, prepared)
    out = jax.block_until_ready(out)

    ref = _reference(x, params)
    assert out.shape == (B, S, V)
    # bf16 matmul operands (f32 accumulation) -> looser tolerance than pure-f32
    err = float(jnp.max(jnp.abs(out - ref)))
    assert err < 3e-2, err
    print("KERNEL_OK")
</pallas_src>

<mosaic_0001>
module attributes {stable_mosaic.version = 11 : i64} {
  func.func @_decoder_kernel(%arg0: i32, %arg1: i32, %arg2: memref<16x32xbf16, #tpu.memory_space<vmem>>, %arg3: memref<32x256xbf16, #tpu.memory_space<vmem>>, %arg4: memref<1x256xf32, #tpu.memory_space<vmem>>, %arg5: memref<16x256xf32, #tpu.memory_space<vmem>>) attributes {dimension_semantics = [#tpu.dimension_semantics<parallel>, #tpu.dimension_semantics<parallel>], iteration_bounds = array<i64: 1, 1>, scalar_prefetch = 0 : i64, scratch_operands = 0 : i64, tpu.core_type = #tpu.core_type<tc>, window_params = [{transform_indices = @transform_0, window_bounds = array<i64: 16, 32>}, {transform_indices = @transform_1, window_bounds = array<i64: 32, 256>}, {transform_indices = @transform_2, window_bounds = array<i64: 1, 256>}, {transform_indices = @transform_3, window_bounds = array<i64: 16, 256>}]} {
    %c0 = arith.constant 0 : index
    %c0_0 = arith.constant 0 : index
    %0 = vector.load %arg2[%c0, %c0_0] : memref<16x32xbf16, #tpu.memory_space<vmem>>, vector<16x32xbf16>
    %c0_1 = arith.constant 0 : index
    %c0_2 = arith.constant 0 : index
    %1 = vector.load %arg3[%c0_1, %c0_2] : memref<32x256xbf16, #tpu.memory_space<vmem>>, vector<32x256xbf16>
    %cst = arith.constant dense<0.000000e+00> : vector<16x256xf32>
    %2 = tpu.matmul %0, %1, %cst {dimension_numbers = #tpu.dot_dimension_numbers<[1], [0], [0], [1], [0, 0, 1, 1], [], []>} : vector<16x32xbf16>, vector<32x256xbf16>, vector<16x256xf32> -> vector<16x256xf32>
    %c0_3 = arith.constant 0 : index
    %c0_4 = arith.constant 0 : index
    %3 = vector.load %arg4[%c0_3, %c0_4] : memref<1x256xf32, #tpu.memory_space<vmem>>, vector<1x256xf32>
    %4 = vector.broadcast %3 : vector<1x256xf32> to vector<16x256xf32>
    %5 = arith.addf %2, %4 : vector<16x256xf32>
    %c0_5 = arith.constant 0 : index
    %c0_6 = arith.constant 0 : index
    %6 = vector.load %arg5[%c0_5, %c0_6] : memref<16x256xf32, #tpu.memory_space<vmem>>, vector<16x256xf32>
    tpu.vector_store %arg5[%c0_5, %c0_6], %5 {strides = array<i32>} : memref<16x256xf32, #tpu.memory_space<vmem>>, vector<16x256xf32>,
    return
  }
  func.func @transform_0(%arg0: i32, %arg1: i32) -> (i32, i32) {
    %c0_i32 = arith.constant 0 : i32
    %c0_i32_0 = arith.constant 0 : i32
    return %arg0, %c0_i32 : i32, i32
  }
  func.func @transform_1(%arg0: i32, %arg1: i32) -> (i32, i32) {
    %c0_i32 = arith.constant 0 : i32
    %c0_i32_0 = arith.constant 0 : i32
    return %c0_i32, %arg1 : i32, i32
  }
  func.func @transform_2(%arg0: i32, %arg1: i32) -> (i32, i32) {
    %c0_i32 = arith.constant 0 : i32
    %c0_i32_0 = arith.constant 0 : i32
    return %c0_i32, %arg1 : i32, i32
  }
  func.func @transform_3(%arg0: i32, %arg1: i32) -> (i32, i32) {
    %c0_i32 = arith.constant 0 : i32
    return %arg0, %arg1 : i32, i32
  }
}

module attributes {stable_mosaic.version = 11 : i64} {
  func.func @_transform_kernel(%arg0: i32, %arg1: memref<16x32xbf16, #tpu.memory_space<vmem>>, %arg2: memref<32x32xbf16, #tpu.memory_space<vmem>>, %arg3: memref<1x32xf32, #tpu.memory_space<vmem>>, %arg4: memref<1x32xf32, #tpu.memory_space<vmem>>, %arg5: memref<1x32xf32, #tpu.memory_space<vmem>>, %arg6: memref<16x32xbf16, #tpu.memory_space<vmem>>) attributes {dimension_semantics = [#tpu.dimension_semantics<parallel>], iteration_bounds = array<i64: 1>, scalar_prefetch = 0 : i64, scratch_operands = 0 : i64, tpu.core_type = #tpu.core_type<tc>, window_params = [{transform_indices = @transform_0, window_bounds = array<i64: 16, 32>}, {pipeline_mode = #tpu.pipeline_mode<synchronous>, transform_indices = @transform_1, window_bounds = array<i64: 32, 32>}, {pipeline_mode = #tpu.pipeline_mode<synchronous>, transform_indices = @transform_2, window_bounds = array<i64: 1, 32>}, {pipeline_mode = #tpu.pipeline_mode<synchronous>, transform_indices = @transform_3, window_bounds = array<i64: 1, 32>}, {pipeline_mode = #tpu.pipeline_mode<synchronous>, transform_indices = @transform_4, window_bounds = array<i64: 1, 32>}, {transform_indices = @transform_5, window_bounds = array<i64: 16, 32>}]} {
    %c0 = arith.constant 0 : index
    %c0_0 = arith.constant 0 : index
    %0 = vector.load %arg1[%c0, %c0_0] : memref<16x32xbf16, #tpu.memory_space<vmem>>, vector<16x32xbf16>
    %c0_1 = arith.constant 0 : index
    %c0_2 = arith.constant 0 : index
    %1 = vector.load %arg2[%c0_1, %c0_2] : memref<32x32xbf16, #tpu.memory_space<vmem>>, vector<32x32xbf16>
    %cst = arith.constant dense<0.000000e+00> : vector<16x32xf32>
    %2 = tpu.matmul %0, %1, %cst {dimension_numbers = #tpu.dot_dimension_numbers<[1], [0], [0], [1], [0, 0, 1, 1], [], []>} : vector<16x32xbf16>, vector<32x32xbf16>, vector<16x32xf32> -> vector<16x32xf32>
    %c0_3 = arith.constant 0 : index
    %c0_4 = arith.constant 0 : index
    %3 = vector.load %arg3[%c0_3, %c0_4] : memref<1x32xf32, #tpu.memory_space<vmem>>, vector<1x32xf32>
    %4 = vector.broadcast %3 : vector<1x32xf32> to vector<16x32xf32>
    %5 = arith.addf %2, %4 : vector<16x32xf32>
    %cst_5 = arith.constant 5.000000e-01 : f32
    %6 = vector.broadcast %cst_5 : f32 to vector<16x32xf32>
    %7 = arith.mulf %6, %5 : vector<16x32xf32>
    %cst_6 = arith.constant 1.41421354 : f32
    %8 = vector.broadcast %cst_6 : f32 to vector<16x32xf32>
    %9 = arith.divf %5, %8 : vector<16x32xf32>
    %10 = math.erf %9 : vector<16x32xf32>
    %cst_7 = arith.constant 1.000000e+00 : f32
    %11 = vector.broadcast %cst_7 : f32 to vector<16x32xf32>
    %12 = arith.addf %11, %10 : vector<16x32xf32>
    %13 = arith.mulf %7, %12 : vector<16x32xf32>
    %cst_8 = arith.constant dense<0.000000e+00> : vector<16xf32>
    %14 = vector.multi_reduction <add>, %13, %cst_8 [1] : vector<16x32xf32> to vector<16xf32>
    %15 = vector.shape_cast %14 : vector<16xf32> to vector<16x1xf32>
    %cst_9 = arith.constant 3.200000e+01 : f32
    %16 = vector.broadcast %cst_9 : f32 to vector<16x1xf32>
    %17 = arith.divf %15, %16 : vector<16x1xf32>
    %18 = vector.broadcast %17 : vector<16x1xf32> to vector<16x32xf32>
    %19 = arith.subf %13, %18 : vector<16x32xf32>
    %20 = arith.mulf %19, %19 : vector<16x32xf32>
    %cst_10 = arith.constant dense<0.000000e+00> : vector<16xf32>
    %21 = vector.multi_reduction <add>, %20, %cst_10 [1] : vector<16x32xf32> to vector<16xf32>
    %22 = vector.shape_cast %21 : vector<16xf32> to vector<16x1xf32>
    %cst_11 = arith.constant 3.200000e+01 : f32
    %23 = vector.broadcast %cst_11 : f32 to vector<16x1xf32>
    %24 = arith.divf %22, %23 : vector<16x1xf32>
    %25 = vector.broadcast %17 : vector<16x1xf32> to vector<16x32xf32>
    %26 = arith.subf %13, %25 : vector<16x32xf32>
    %cst_12 = arith.constant 9.99999996E-13 : f32
    %27 = vector.broadcast %cst_12 : f32 to vector<16x1xf32>
    %28 = arith.addf %24, %27 : vector<16x1xf32>
    %29 = math.rsqrt %28 : vector<16x1xf32>
    %30 = vector.broadcast %29 : vector<16x1xf32> to vector<16x32xf32>
    %31 = arith.mulf %26, %30 : vector<16x32xf32>
    %c0_13 = arith.constant 0 : index
    %c0_14 = arith.constant 0 : index
    %32 = vector.load %arg4[%c0_13, %c0_14] : memref<1x32xf32, #tpu.memory_space<vmem>>, vector<1x32xf32>
    %33 = vector.broadcast %32 : vector<1x32xf32> to vector<16x32xf32>
    %34 = arith.mulf %31, %33 : vector<16x32xf32>
    %c0_15 = arith.constant 0 : index
    %c0_16 = arith.constant 0 : index
    %35 = vector.load %arg5[%c0_15, %c0_16] : memref<1x32xf32, #tpu.memory_space<vmem>>, vector<1x32xf32>
    %36 = vector.broadcast %35 : vector<1x32xf32> to vector<16x32xf32>
    %37 = arith.addf %34, %36 : vector<16x32xf32>
    %38 = arith.truncf %37 : vector<16x32xf32> to vector<16x32xbf16>
    %c0_17 = arith.constant 0 : index
    %c0_18 = arith.constant 0 : index
    %39 = vector.load %arg6[%c0_17, %c0_18] : memref<16x32xbf16, #tpu.memory_space<vmem>>, vector<16x32xbf16>
    tpu.vector_store %arg6[%c0_17, %c0_18], %38 {strides = array<i32>} : memref<16x32xbf16, #tpu.memory_space<vmem>>, vector<16x32xbf16>,
    return
  }
  func.func @transform_0(%arg0: i32) -> (i32, i32) {
    %c0_i32 = arith.constant 0 : i32
    %c0_i32_0 = arith.constant 0 : i32
    return %arg0, %c0_i32 : i32, i32
  }
  func.func @transform_1(%arg0: i32) -> (i32, i32) {
    %c0_i32 = arith.constant 0 : i32
    %c0_i32_0 = arith.constant 0 : i32
    %c0_i32_1 = arith.constant 0 : i32
    return %c0_i32, %c0_i32_0 : i32, i32
  }
  func.func @transform_2(%arg0: i32) -> (i32, i32) {
    %c0_i32 = arith.constant 0 : i32
    %c0_i32_0 = arith.constant 0 : i32
    %c0_i32_1 = arith.constant 0 : i32
    return %c0_i32, %c0_i32_0 : i32, i32
  }
  func.func @transform_3(%arg0: i32) -> (i32, i32) {
    %c0_i32 = arith.constant 0 : i32
    %c0_i32_0 = arith.constant 0 : i32
    %c0_i32_1 = arith.constant 0 : i32
    return %c0_i32, %c0_i32_0 : i32, i32
  }
  func.func @transform_4(%arg0: i32) -> (i32, i32) {
    %c0_i32 = arith.constant 0 : i32
    %c0_i32_0 = arith.constant 0 : i32
    %c0_i32_1 = arith.constant 0 : i32
    return %c0_i32, %c0_i32_0 : i32, i32
  }
  func.func @transform_5(%arg0: i32) -> (i32, i32) {
    %c0_i32 = arith.constant 0 : i32
    %c0_i32_0 = arith.constant 0 : i32
    return %arg0, %c0_i32 : i32, i32
  }
}

</mosaic_0001>

<bundles_post_ra>
// kernel: decoder_prediction_head.2
= control target key start
LH: loop header
LB: loop body
LE: loop exit
PB: predicated region body
PF: predicated region fallthrough
CT: control target
= control target key end

     0   :  { %10 = vsyncpa [#allocation3], 0  ;;  %s240_s18 = smov [#allocation2]   ;;  %s311_s0 = inlined_call_operand.vmem [shape: bf16[16,32], index: 0, kind: input, shape index: {}]   ;;  %s312_s1 = inlined_call_operand.vmem [shape: bf16[32,32], index: 1, kind: input, shape index: {}]   ;;  %s313_s2 = inlined_call_operand.hbm [shape: f32[1,32], index: 2, kind: input, shape index: {}]   ;;  %s314_s3 = inlined_call_operand.vmem [shape: f32[1,32], index: 3, kind: input, shape index: {}]   ;;  %s315_s4 = inlined_call_operand.vmem [shape: f32[1,32], index: 4, kind: input, shape index: {}]   ;;  %s316_s5 = inlined_call_operand.vmem [shape: bf16[16,32], index: 5, kind: output, shape index: {}]  }
   0x1   :  { %s21_s19 = sshll.u32 %s240_s18, 4  ;;  %s216_s22 = scalar_lea.hbm %s313_s2, 16  ;;  %s22_s19 = int_to_ptr.vmem [resolvable:$true] %s21_s19 }
   0x2   :  { %p217_p0 = scmp.ne.s32.totalorder %s313_s2, %s216_s22  ;;  %p220_p1 = scmp.lt.u32.totalorder %s216_s22, %s313_s2 }
   0x4   :  { %p222_p2 = pnand %p220_p1, %p217_p0 }
   0x6   :  { %225 = shalt.err (!%p222_p2)
}
   0x7   :  { %s226_s27 = scalar_lea.vmem %s22_s19, 16  ;;  %s230_s28 = scalar_lea.vmem %s22_s19, 32 }
   0x8   :  { %p227_p3 = scmp.ne.s32.totalorder %s22_s19, %s226_s27  ;;  %p231_p4 = scmp.lt.s32.totalorder %s22_s19, %s22_s19 }
   0x9   :  { %p232_p5 = scmp.lt.s32.totalorder %s230_s28, %s226_s27 }
   0xb   :  { %p233_p6 = por %p232_p5, %p231_p4 }
   0xd   :  { %p234_p7 = pnand %p233_p6, %p227_p3 }
   0xf   :  { %237 = shalt.err (!%p234_p7)
}
  0x10   :  { %24 = dma.hbm_to_vmem [thread:$0]  %s313_s2, 16, %s22_s19, [#allocation3]  }
  0x11   :  { %238 = dma.done.wait [#allocation3], 16  }
  0x12   :  { %239 = vsyncadd [#allocation3], 4294967280  ;;  %v241_v0 = vmov 0.0   ;;  %vm242_vm0 = vmmov 0   ;;  %v205_v1 = vld [vmem:[%s312_s1] sm:$0xff]   ;;  %v206_v2 = vld [vmem:[%s312_s1 + $0x8] sm:$0xff]  }
  0x13   :  { %194 = vmatprep.subr.bf16.mxu0 %v241_v0  ;;  %198 = vmatprep.mubr.msk.bf16.mxu0 %vm242_vm0, %v241_v0  ;;  %v207_v3 = vld [vmem:[%s311_s0] sm:$0xff]   ;;  %vm63_vm1 = vcmask 261120   ;;  %vm172_vm2 = vcmask 257024  }
  0x14   :  { %195 = vmatpush3.bf16.msra.mxu0 %v205_v1  ;;  %v180_v4 = vld [vmem:[#allocation2] ss:$0 sm:$0xff] }
  0x15   :  { %196 = vmatprep.subr.bf16.mxu0 %v241_v0  ;;  %v185_v40 = vld [vmem:[%s314_s3] ss:$0 sm:$0xff] }
  0x16   :  { %v186_v42 = vld [vmem:[%s315_s4] ss:$0 sm:$0xff] }
  0x18   :  { %197 = vmatpush3.bf16.msra.mxu0 %v206_v2 }
  0x1b   :  { %199 = vmatmul.mubr.msk.bf16.vlgmr.msra.gmra.mrb[0].mxu0 %vm63_vm1, %v207_v3 }
  0xee   :  { %v101_v5 = vpop.f32.mrb[0].mxu0 }
  0xef   :  { %v102_v6 = vadd.f32 %v180_v4, %v101_v5  ;;  %v200_v7 = vpop.f32.mrb[1].mxu0 }
  0xf0   :  { %v104_v8 = vpop.f32.mrb[2].mxu0 }
  0xf1   :  { %v111_v9 = vmul.f32 0.70710677, %v102_v6  ;;  %v105_v10 = vadd.f32 %v180_v4, %v104_v8  ;;  %v201_v11 = vpop.f32.mrb[3].mxu0  ;;  %v108_v14 = vmul.f32 0.5, %v102_v6 }
  0xf3   :  { %208 = verf.f32 %v111_v9  ;;  %v112_v12 = vmul.f32 0.70710677, %v105_v10  ;;  %v109_v17 = vmul.f32 0.5, %v105_v10 }
  0xf5   :  { %210 = verf.f32 %v112_v12 }
  0xfd   :  { %v209_v13 = vpop.eup %208 }
  0xfe   :  { %v115_v15 = vadd.f32 1.0, %v209_v13 }
  0xff   :  { %v211_v16 = vpop.eup %210 }
 0x100   :  { %v117_v18 = vmul.f32 %v115_v15, %v108_v14  ;;  %v116_v19 = vadd.f32 1.0, %v211_v16 }
 0x102   :  { %v119_v20 = vsel %vm63_vm1, %v117_v18, 0.0  ;;  %v118_v21 = vmul.f32 %v116_v19, %v109_v17 }
 0x103   :  { %120 = vadd.xlane.f32.xlu0 %v119_v20 }
 0x104   :  { %v122_v22 = vsel %vm63_vm1, %v118_v21, 0.0 }
 0x107   :  { %123 = vadd.xlane.f32.xlu0 %v122_v22 }
 0x190   :  { %v121_v23 = vpop.xlane.xlu0 %120 }
 0x191   :  { %v126_v24 = vmul.f32 0.03125, %v121_v23 }
 0x193   :  { %v128_v25 = vsub.f32 %v117_v18, %v126_v24 }
 0x194   :  { %v124_v26 = vpop.xlane.xlu0 %123 }
 0x195   :  { %v127_v27 = vmul.f32 0.03125, %v124_v26  ;;  %v130_v28 = vmul.f32 %v128_v25, %v128_v25 }
 0x197   :  { %v129_v29 = vsub.f32 %v118_v21, %v127_v27  ;;  %v132_v30 = vsel %vm63_vm1, %v130_v28, 0.0 }
 0x198   :  { %133 = vadd.xlane.f32.xlu1 %v132_v30 }
 0x199   :  { %v131_v31 = vmul.f32 %v129_v29, %v129_v29 }
 0x19b   :  { %v135_v32 = vsel %vm63_vm1, %v131_v31, 0.0 }
 0x19c   :  { %136 = vadd.xlane.f32.xlu1 %v135_v32 }
 0x225   :  { %v134_v33 = vpop.xlane.xlu1 %133 }
 0x226   :  { %v138_v34 = vmul.f32 0.03125, %v134_v33 }
 0x228   :  { %v140_v35 = vadd.f32 1e-12, %v138_v34 }
 0x229   :  { %v137_v36 = vpop.xlane.xlu1 %136 }
 0x22a   :  { %212 = vrsqrt.f32 %v140_v35  ;;  %v139_v37 = vmul.f32 0.03125, %v137_v36 }
 0x22c   :  { %v141_v38 = vadd.f32 1e-12, %v139_v37 }
 0x22e   :  { %214 = vrsqrt.f32 %v141_v38 }
 0x234   :  { %v213_v39 = vpop.eup %212 }
 0x235   :  { %v144_v41 = vmul.f32 %v213_v39, %v128_v25 }
 0x237   :  { %v153_v43 = vmul.f32 %v185_v40, %v144_v41 }
 0x238   :  { %v215_v44 = vpop.eup %214 }
 0x239   :  { %v162_v45 = vadd.f32 %v186_v42, %v153_v43  ;;  %v145_v46 = vmul.f32 %v215_v44, %v129_v29 }
 0x23b   :  { %v189_v47 = vpack.c.bf16 %v162_v45, %v162_v45  ;;  %v154_v48 = vmul.f32 %v185_v40, %v145_v46 }
 0x23d   :  { %173 = vst.msk [vmem:[%s316_s5] sm:$0xf] %vm172_vm2, %v189_v47  ;;  %v163_v49 = vadd.f32 %v186_v42, %v154_v48 }
 0x23f   :  { %v190_v50 = vpack.c.bf16 %v163_v49, %v163_v49 }
 0x241   :  { %174 = vst.msk [vmem:[%s316_s5 + $0x4] sm:$0xf] %vm172_vm2, %v190_v50 }
 0x242   :  { %179 = vsyncpa [#allocation3], 1 }

// kernel: decoder_prediction_head.3
= control target key start
LH: loop header
LB: loop body
LE: loop exit
PB: predicated region body
PF: predicated region fallthrough
CT: control target
= control target key end

     0   :  { %v167_v2 = vmov 0   ;;  %s221_s0 = inlined_call_operand.vmem [shape: bf16[16,32], index: 0, kind: input, shape index: {}]   ;;  %s222_s1 = inlined_call_operand.vmem [shape: bf16[32,256], index: 1, kind: input, shape index: {}]   ;;  %s223_s2 = inlined_call_operand.vmem [shape: f32[1,256], index: 2, kind: input, shape index: {}]   ;;  %s224_s3 = inlined_call_operand.hbm [shape: f32[16,256], index: 3, kind: output, shape index: {}]  }
   0x1   :  { %v136_v0 = vld [vmem:[%s222_s1 + $0x4] ss:$8 sps:$4 sm:$0xff]   ;;  %v138_v1 = vld [vmem:[%s222_s1] ss:$8 sps:$4 sm:$0xff]   ;;  %95 = vmatprep.mubr.bf16.mxu0 %v167_v2  ;;  %v139_v3 = vld [vmem:[%s222_s1 + $0x14] ss:$8 sps:$4 sm:$0xff]  }
   0x2   :  { %63 = vmatprep.subr.bf16.mxu0 %v136_v0  ;;  %v141_v4 = vld [vmem:[%s222_s1 + $0x10] ss:$8 sps:$4 sm:$0xff]  }
   0x3   :  { %64 = vmatpush1.bf16.msra.mxu0 %v138_v1 }
   0x4   :  { %65 = vmatprep.subr.bf16.mxu0 %v139_v3 }
   0x5   :  { %8 = vsyncpa [#allocation3], 0  ;;  %v142_v5 = vld [vmem:[%s221_s0] sm:$0xff]   ;;  %vm59_vm0 = vcmask 261120   ;;  %v24_v6 = vlaneseq  ;;  %s168_s1 = smov [#allocation2]  }
   0x6   :  { %v22_v9 = vld [vmem:[%s223_s2] sm:$0x3]  ;;  %s115_s24 = sshll.u32 %s168_s1, 4  ;;  %s116_s24 = int_to_ptr.vmem [resolvable:$true] %s115_s24 }
   0x7   :  { %66 = vmatpush1.bf16.msra.mxu0 %v141_v4  ;;  %v25_v7 = vshrl.u32 %v24_v6, 7  ;;  %s143_s0 = scalar_lea.vmem %s116_s24, 512  ;;  %p148_p1 = scmp.lt.s32.totalorder %s116_s24, %s116_s24 }
   0x8   :  { %p144_p0 = scmp.ne.s32.totalorder %s116_s24, %s143_s0  ;;  %p149_p2 = scmp.lt.s32.totalorder %s143_s0, %s143_s0 }
   0x9   :  { %v26_v8 = vsub.s32 0, %v25_v7  ;;  %v30_v10 = vsub.s32 1, %v25_v7 }
   0xa   :  { %131 = vmatmul.mubr.msk.bf16.vlgmr.msra.gmra.mrb[0].mxu0 %vm59_vm0, %v142_v5  ;;  %p150_p3 = por %p149_p2, %p148_p1 }
   0xb   :  { %v27_v11 = vrot.slane %v22_v9, %v26_v8  ;;  %v31_v12 = vrot.slane %v22_v9, %v30_v10 }
   0xc   :  { %p151_p4 = pnand %p150_p3, %p144_p0 }
  0xdd   :  { %v97_v13 = vpop.f32.mrb[0].mxu0 }
  0xde   :  { %v98_v14 = vadd.f32 %v97_v13, %v27_v11  ;;  %v99_v15 = vpop.f32.mrb[1].mxu0 }
  0xdf   :  { %v100_v16 = vadd.f32 %v99_v15, %v31_v12  ;;  %v101_v17 = vpop.f32.mrb[2].mxu0 }
  0xe0   :  { %106 = vst [vmem:[#allocation2] sm:$0xff] %v98_v14  ;;  %v102_v18 = vadd.f32 %v101_v17, %v27_v11  ;;  %v103_v19 = vpop.f32.mrb[3].mxu0 }
  0xe1   :  { %107 = vst [vmem:[#allocation2 + $0x8] sm:$0xff] %v100_v16  ;;  %v104_v20 = vadd.f32 %v103_v19, %v31_v12 }
  0xe2   :  { %108 = vst [vmem:[#allocation2 + $0x10] sm:$0xff] %v102_v18 }
  0xe3   :  { %109 = vst [vmem:[#allocation2 + $0x18] sm:$0xff] %v104_v20 }
  0xe4   :  { %154 = shalt.err (!%p151_p4)
}
  0xe5   :  { %s155_s26 = scalar_lea.hbm %s224_s3, 512 }
  0xe6   :  { %p156_p5 = scmp.ne.s32.totalorder %s224_s3, %s155_s26  ;;  %p159_p6 = scmp.lt.u32.totalorder %s155_s26, %s224_s3 }
  0xe8   :  { %p161_p7 = pnand %p159_p6, %p156_p5 }
  0xea   :  { %164 = shalt.err (!%p161_p7)
}
  0xeb   :  { %s169_s4 = smov 256   ;;  %s170_s5 = smov 16  }
  0xec   :  { %121 = dma.vmem_to_hbm [thread:$0]  %s116_s24, 512, %s224_s3, [#allocation3], %s169_s4, %s169_s4, %s170_s5  }
  0xed   :  { %165 = dma.done.wait [#allocation3], 512  }
  0xee   :  { %166 = vsyncadd [#allocation3], 4294966784 }
  0xef   :  { %125 = vsyncpa [#allocation3], 1 }

</bundles_post_ra>
